<compile_context>
chip_gen: v5e
topology: v5e:2x2
jax: 0.10.0
libtpu: 0.0.40
codegen_flags: <defaults>
</compile_context>

<pallas_src>
import math
import jax
import jax.numpy as jnp
from jax.experimental import pallas as pl
from jax.experimental.pallas import tpu as pltpu


# ---------------------------------------------------------------------------
# Pallas kernel: both critic MLPs unrolled (Linear -> ReLU -> Linear -> ReLU
# -> Linear), layer 1 fused across critics.
# ---------------------------------------------------------------------------
def _sac_critic_kernel(obs_ref, act_ref, w1o_ref, w1a_ref, b1_ref,
                       w2_ref, b2_ref, w3_ref, b3_ref, out_ref):
    n_critics, H1, H2 = w2_ref.shape

    obs = obs_ref[...]                                   # (B, obs_dim) f32
    act = act_ref[...]                                   # (B, act_dim) f32

    # Layer 1 for all critics at once: (B, n_critics * H1).
    # Split weight rows (obs / action) replaces the HBM concat in the wrapper.
    h1 = (jnp.dot(obs, w1o_ref[...], preferred_element_type=jnp.float32)
          + jnp.dot(act, w1a_ref[...], preferred_element_type=jnp.float32)
          + b1_ref[...])
    h1 = jnp.maximum(h1, 0.0)                            # ReLU

    for c in range(n_critics):                           # static unroll
        h1_c = h1[:, c * H1:(c + 1) * H1]                # (B, H1)

        # Layer 2 (per critic).
        h2 = jnp.dot(h1_c, w2_ref[c],
                     preferred_element_type=jnp.float32) + b2_ref[c]
        h2 = jnp.maximum(h2, 0.0)                        # (B, H2)

        # Layer 3: N=1 output column -> VPU multiply + XLU lane reduce instead
        # of a wasteful N=1 MXU pass.
        q_c = jnp.sum(h2 * w3_ref[c], axis=-1, keepdims=True)   # (B, 1)
        q_c = q_c + b3_ref[:, c:c + 1]

        out_ref[:, c:c + 1] = q_c.astype(out_ref.dtype)


# ---------------------------------------------------------------------------
# Wrapper: single grid-less pallas_call, whole arrays resident in VMEM.
# ---------------------------------------------------------------------------
def sac_critic_forward(obs, action, params):
    """Returns a tuple of n_critics arrays, each of shape (batch, 1)."""
    w1o, w1a, b1, w2, b2, w3, b3 = params
    B = obs.shape[0]
    n_critics, H1, H2 = w2.shape
    D_in = w1o.shape[0] + w1a.shape[0]

    flops = (2 * B * D_in * n_critics * H1
             + n_critics * (2 * B * H1 * H2 + 2 * B * H2))
    bytes_accessed = 4 * (obs.size + action.size
                          + sum(int(p.size) for p in params)
                          + B * n_critics)

    vmem = pltpu.MemorySpace.VMEM
    out = pl.pallas_call(
        _sac_critic_kernel,
        out_shape=jax.ShapeDtypeStruct((B, n_critics), jnp.float32),
        in_specs=[pl.BlockSpec(memory_space=vmem)] * 9,
        out_specs=pl.BlockSpec(memory_space=vmem),
        cost_estimate=pl.CostEstimate(flops=int(flops), transcendentals=0,
                                      bytes_accessed=int(bytes_accessed)),
    )(obs, action, w1o, w1a, b1, w2, b2, w3, b3)

    # Split the lane-contiguous (B, n_critics) result into the tuple of
    # (B, 1) tensors that SAC_Critic.forward returns.
    return tuple(out[:, c:c + 1] for c in range(n_critics))


# ---------------------------------------------------------------------------
# Parameter init matching the module's _init_weights:
# kaiming_uniform_(nonlinearity='relu') -> bound = sqrt(6 / fan_in), bias = 0.
# ---------------------------------------------------------------------------
def _kaiming_uniform(key, fan_in, fan_out):
    bound = math.sqrt(6.0 / fan_in)
    # weight stored (in, out) so y = x @ W
    return jax.random.uniform(key, (fan_in, fan_out), jnp.float32,
                              minval=-bound, maxval=bound)


def init_sac_critic_params(key, obs_dim, action_dim,
                           critic_hidden_dims=(256, 256), n_critics=2):
    d_in = obs_dim + action_dim
    h1, h2 = critic_hidden_dims
    w1s, w2s, w3s = [], [], []
    for _ in range(n_critics):
        k1, k2, k3, key = jax.random.split(key, 4)
        w1s.append(_kaiming_uniform(k1, d_in, h1))       # (d_in, h1)
        w2s.append(_kaiming_uniform(k2, h1, h2))         # (h1, h2)
        w3s.append(_kaiming_uniform(k3, h2, 1))          # (h2, 1)

    w1_all = jnp.concatenate(w1s, axis=-1)               # (d_in, n*h1)
    w1o = w1_all[:obs_dim]                               # (obs_dim, n*h1)
    w1a = w1_all[obs_dim:]                               # (action_dim, n*h1)
    b1 = jnp.zeros((1, n_critics * h1), jnp.float32)

    w2 = jnp.stack(w2s)                                  # (n, h1, h2)
    b2 = jnp.zeros((n_critics, 1, h2), jnp.float32)

    w3 = jnp.stack([w.reshape(1, h2) for w in w3s])      # (n, 1, h2)
    b3 = jnp.zeros((1, n_critics), jnp.float32)
    return (w1o, w1a, b1, w2, b2, w3, b3)


# ---------------------------------------------------------------------------
# Pure-JAX reference for validation
# ---------------------------------------------------------------------------
def sac_critic_reference(obs, action, params):
    w1o, w1a, b1, w2, b2, w3, b3 = params
    n_critics, h1, _ = w2.shape
    pre1 = obs @ w1o + action @ w1a + b1                 # (B, n*h1)
    outs = []
    for c in range(n_critics):
        h = jnp.maximum(pre1[:, c * h1:(c + 1) * h1], 0.0)
        h = jnp.maximum(h @ w2[c] + b2[c], 0.0)
        q = h @ w3[c].T + b3[:, c:c + 1]                 # (B, 1)
        outs.append(q)
    return tuple(outs)


if __name__ == "__main__":
    key = jax.random.PRNGKey(0)
    k_obs, k_act, k_par = jax.random.split(key, 3)

    batch = 8
    obs_dim = 16
    action_dim = 8
    hidden = (32, 32)
    n_critics = 2

    obs = jax.random.normal(k_obs, (batch, obs_dim), jnp.float32)
    action = jax.random.normal(k_act, (batch, action_dim), jnp.float32)
    params = init_sac_critic_params(k_par, obs_dim, action_dim, hidden,
                                    n_critics)

    q_vals = sac_critic_forward(obs, action, params)
    q_vals = jax.block_until_ready(q_vals)

    q_ref = sac_critic_reference(obs, action, params)
    for q, r in zip(q_vals, q_ref):
        assert q.shape == (batch, 1)
        assert jnp.allclose(q, r, atol=1e-5, rtol=1e-5), "mismatch vs reference"

    print("KERNEL_OK")
</pallas_src>

<mosaic_0001>
module attributes {stable_mosaic.version = 11 : i64} {
  func.func @_sac_critic_kernel(%arg0: memref<8x16xf32, #tpu.memory_space<vmem>>, %arg1: memref<8x8xf32, #tpu.memory_space<vmem>>, %arg2: memref<16x64xf32, #tpu.memory_space<vmem>>, %arg3: memref<8x64xf32, #tpu.memory_space<vmem>>, %arg4: memref<1x64xf32, #tpu.memory_space<vmem>>, %arg5: memref<2x32x32xf32, #tpu.memory_space<vmem>>, %arg6: memref<2x1x32xf32, #tpu.memory_space<vmem>>, %arg7: memref<2x1x32xf32, #tpu.memory_space<vmem>>, %arg8: memref<1x2xf32, #tpu.memory_space<vmem>>, %arg9: memref<8x2xf32, #tpu.memory_space<vmem>>) attributes {dimension_semantics = [], scalar_prefetch = 0 : i64, scratch_operands = 0 : i64, tpu.core_type = #tpu.core_type<tc>} {
    %c0 = arith.constant 0 : index
    %c0_0 = arith.constant 0 : index
    %0 = vector.load %arg0[%c0, %c0_0] : memref<8x16xf32, #tpu.memory_space<vmem>>, vector<8x16xf32>
    %c0_1 = arith.constant 0 : index
    %c0_2 = arith.constant 0 : index
    %1 = vector.load %arg1[%c0_1, %c0_2] : memref<8x8xf32, #tpu.memory_space<vmem>>, vector<8x8xf32>
    %c0_3 = arith.constant 0 : index
    %c0_4 = arith.constant 0 : index
    %2 = vector.load %arg2[%c0_3, %c0_4] : memref<16x64xf32, #tpu.memory_space<vmem>>, vector<16x64xf32>
    %cst = arith.constant dense<0.000000e+00> : vector<8x64xf32>
    %3 = tpu.matmul %0, %2, %cst {dimension_numbers = #tpu.dot_dimension_numbers<[1], [0], [0], [1], [0, 0, 1, 1], [], []>} : vector<8x16xf32>, vector<16x64xf32>, vector<8x64xf32> -> vector<8x64xf32>
    %c0_5 = arith.constant 0 : index
    %c0_6 = arith.constant 0 : index
    %4 = vector.load %arg3[%c0_5, %c0_6] : memref<8x64xf32, #tpu.memory_space<vmem>>, vector<8x64xf32>
    %cst_7 = arith.constant dense<0.000000e+00> : vector<8x64xf32>
    %5 = tpu.matmul %1, %4, %cst_7 {dimension_numbers = #tpu.dot_dimension_numbers<[1], [0], [0], [1], [0, 0, 1, 1], [], []>} : vector<8x8xf32>, vector<8x64xf32>, vector<8x64xf32> -> vector<8x64xf32>
    %6 = arith.addf %3, %5 : vector<8x64xf32>
    %c0_8 = arith.constant 0 : index
    %c0_9 = arith.constant 0 : index
    %7 = vector.load %arg4[%c0_8, %c0_9] : memref<1x64xf32, #tpu.memory_space<vmem>>, vector<1x64xf32>
    %8 = vector.broadcast %7 : vector<1x64xf32> to vector<8x64xf32>
    %9 = arith.addf %6, %8 : vector<8x64xf32>
    %cst_10 = arith.constant 0.000000e+00 : f32
    %10 = vector.broadcast %cst_10 : f32 to vector<8x64xf32>
    %11 = arith.maximumf %9, %10 : vector<8x64xf32>
    %12 = vector.extract_strided_slice %11 {offsets = [0, 0], sizes = [8, 32], strides = [1, 1]} : vector<8x64xf32> to vector<8x32xf32>
    %c0_11 = arith.constant 0 : index
    %c0_12 = arith.constant 0 : index
    %c0_13 = arith.constant 0 : index
    %13 = vector.load %arg5[%c0_11, %c0_12, %c0_13] : memref<2x32x32xf32, #tpu.memory_space<vmem>>, vector<1x32x32xf32>
    %14 = vector.shape_cast %13 : vector<1x32x32xf32> to vector<32x32xf32>
    %cst_14 = arith.constant dense<0.000000e+00> : vector<8x32xf32>
    %15 = tpu.matmul %12, %14, %cst_14 {dimension_numbers = #tpu.dot_dimension_numbers<[1], [0], [0], [1], [0, 0, 1, 1], [], []>} : vector<8x32xf32>, vector<32x32xf32>, vector<8x32xf32> -> vector<8x32xf32>
    %c0_15 = arith.constant 0 : index
    %c0_16 = arith.constant 0 : index
    %c0_17 = arith.constant 0 : index
    %16 = vector.load %arg6[%c0_15, %c0_16, %c0_17] : memref<2x1x32xf32, #tpu.memory_space<vmem>>, vector<1x1x32xf32>
    %17 = vector.shape_cast %16 : vector<1x1x32xf32> to vector<1x32xf32>
    %18 = vector.broadcast %17 : vector<1x32xf32> to vector<8x32xf32>
    %19 = arith.addf %15, %18 : vector<8x32xf32>
    %cst_18 = arith.constant 0.000000e+00 : f32
    %20 = vector.broadcast %cst_18 : f32 to vector<8x32xf32>
    %21 = arith.maximumf %19, %20 : vector<8x32xf32>
    %c0_19 = arith.constant 0 : index
    %c0_20 = arith.constant 0 : index
    %c0_21 = arith.constant 0 : index
    %22 = vector.load %arg7[%c0_19, %c0_20, %c0_21] : memref<2x1x32xf32, #tpu.memory_space<vmem>>, vector<1x1x32xf32>
    %23 = vector.shape_cast %22 : vector<1x1x32xf32> to vector<1x32xf32>
    %24 = vector.broadcast %23 : vector<1x32xf32> to vector<8x32xf32>
    %25 = arith.mulf %21, %24 : vector<8x32xf32>
    %cst_22 = arith.constant dense<0.000000e+00> : vector<8xf32>
    %26 = vector.multi_reduction <add>, %25, %cst_22 [1] : vector<8x32xf32> to vector<8xf32>
    %27 = vector.shape_cast %26 : vector<8xf32> to vector<8x1xf32>
    %c0_23 = arith.constant 0 : index
    %c0_24 = arith.constant 0 : index
    %28 = vector.load %arg8[%c0_23, %c0_24] : memref<1x2xf32, #tpu.memory_space<vmem>>, vector<1x1xf32>
    %29 = vector.broadcast %28 : vector<1x1xf32> to vector<8x1xf32>
    %30 = arith.addf %27, %29 : vector<8x1xf32>
    %c0_25 = arith.constant 0 : index
    %c0_26 = arith.constant 0 : index
    %31 = vector.load %arg9[%c0_25, %c0_26] : memref<8x2xf32, #tpu.memory_space<vmem>>, vector<8x1xf32>
    tpu.vector_store %arg9[%c0_25, %c0_26], %30 {strides = array<i32>} : memref<8x2xf32, #tpu.memory_space<vmem>>, vector<8x1xf32>,
    %32 = vector.extract_strided_slice %11 {offsets = [0, 32], sizes = [8, 32], strides = [1, 1]} : vector<8x64xf32> to vector<8x32xf32>
    %c1 = arith.constant 1 : index
    %c0_27 = arith.constant 0 : index
    %c0_28 = arith.constant 0 : index
    %33 = vector.load %arg5[%c1, %c0_27, %c0_28] : memref<2x32x32xf32, #tpu.memory_space<vmem>>, vector<1x32x32xf32>
    %34 = vector.shape_cast %33 : vector<1x32x32xf32> to vector<32x32xf32>
    %cst_29 = arith.constant dense<0.000000e+00> : vector<8x32xf32>
    %35 = tpu.matmul %32, %34, %cst_29 {dimension_numbers = #tpu.dot_dimension_numbers<[1], [0], [0], [1], [0, 0, 1, 1], [], []>} : vector<8x32xf32>, vector<32x32xf32>, vector<8x32xf32> -> vector<8x32xf32>
    %c1_30 = arith.constant 1 : index
    %c0_31 = arith.constant 0 : index
    %c0_32 = arith.constant 0 : index
    %36 = vector.load %arg6[%c1_30, %c0_31, %c0_32] : memref<2x1x32xf32, #tpu.memory_space<vmem>>, vector<1x1x32xf32>
    %37 = vector.shape_cast %36 : vector<1x1x32xf32> to vector<1x32xf32>
    %38 = vector.broadcast %37 : vector<1x32xf32> to vector<8x32xf32>
    %39 = arith.addf %35, %38 : vector<8x32xf32>
    %cst_33 = arith.constant 0.000000e+00 : f32
    %40 = vector.broadcast %cst_33 : f32 to vector<8x32xf32>
    %41 = arith.maximumf %39, %40 : vector<8x32xf32>
    %c1_34 = arith.constant 1 : index
    %c0_35 = arith.constant 0 : index
    %c0_36 = arith.constant 0 : index
    %42 = vector.load %arg7[%c1_34, %c0_35, %c0_36] : memref<2x1x32xf32, #tpu.memory_space<vmem>>, vector<1x1x32xf32>
    %43 = vector.shape_cast %42 : vector<1x1x32xf32> to vector<1x32xf32>
    %44 = vector.broadcast %43 : vector<1x32xf32> to vector<8x32xf32>
    %45 = arith.mulf %41, %44 : vector<8x32xf32>
    %cst_37 = arith.constant dense<0.000000e+00> : vector<8xf32>
    %46 = vector.multi_reduction <add>, %45, %cst_37 [1] : vector<8x32xf32> to vector<8xf32>
    %47 = vector.shape_cast %46 : vector<8xf32> to vector<8x1xf32>
    %c0_38 = arith.constant 0 : index
    %c1_39 = arith.constant 1 : index
    %48 = vector.load %arg8[%c0_38, %c1_39] : memref<1x2xf32, #tpu.memory_space<vmem>>, vector<1x1xf32>
    %49 = vector.broadcast %48 : vector<1x1xf32> to vector<8x1xf32>
    %50 = arith.addf %47, %49 : vector<8x1xf32>
    %c0_40 = arith.constant 0 : index
    %c1_41 = arith.constant 1 : index
    %51 = vector.load %arg9[%c0_40, %c1_41] : memref<8x2xf32, #tpu.memory_space<vmem>>, vector<8x1xf32>
    tpu.vector_store %arg9[%c0_40, %c1_41], %50 {strides = array<i32>} : memref<8x2xf32, #tpu.memory_space<vmem>>, vector<8x1xf32>,
    return
  }
}

</mosaic_0001>

<bundles_post_ra>
// kernel: tpu_custom_call.1
= control target key start
LH: loop header
LB: loop body
LE: loop exit
PB: predicated region body
PF: predicated region fallthrough
CT: control target
= control target key end

     0   :  { %14 = vsyncpa [#allocation3], 0  ;;  %s563_s0 = inlined_call_operand.hbm [shape: f32[8,16], index: 0, kind: input, shape index: {}]   ;;  %s564_s1 = inlined_call_operand.hbm [shape: f32[8,8], index: 1, kind: input, shape index: {}]   ;;  %s565_s2 = inlined_call_operand.hbm [shape: f32[16,64], index: 2, kind: input, shape index: {}]   ;;  %s566_s3 = inlined_call_operand.hbm [shape: f32[8,64], index: 3, kind: input, shape index: {}]   ;;  %s567_s4 = inlined_call_operand.hbm [shape: f32[1,64], index: 4, kind: input, shape index: {}]   ;;  %s568_s5 = inlined_call_operand.hbm [shape: f32[2,32,32], index: 5, kind: input, shape index: {}]   ;;  %s569_s6 = inlined_call_operand.vmem [shape: f32[2,1,32], index: 6, kind: input, shape index: {}]   ;;  %s570_s7 = inlined_call_operand.vmem [shape: f32[2,1,32], index: 7, kind: input, shape index: {}]   ;;  %s571_s8 = inlined_call_operand.vmem [shape: f32[1,2], index: 8, kind: input, shape index: {}]   ;;  %s572_s9 = inlined_call_operand.vmem [shape: f32[8,2], index: 9, kind: output, shape index: {}]  }
   0x1   :  { %15 = vsyncpa [#allocation5], 0 }
   0x2   :  { %16 = vsyncpa [#allocation8], 0  ;;  %s34_s11 = sshll.u32 %s564_s1, 4  ;;  %s35_s11 = int_to_ptr.hbm [resolvable:$true] %s34_s11 }
   0x3   :  { %17 = vsyncpa [#allocation11], 0  ;;  %s458_s12 = smov [#allocation4]   ;;  %s58_s16 = sshll.u32 %s566_s3, 4  ;;  %s59_s16 = int_to_ptr.hbm [resolvable:$true] %s58_s16 }
   0x4   :  { %s36_s13 = sshll.u32 %s458_s12, 4  ;;  %s459_s17 = smov [#allocation7]   ;;  %s37_s13 = int_to_ptr.vmem [resolvable:$true] %s36_s13 }
   0x5   :  { %39 = dma.hbm_to_vmem [thread:$0]  %s35_s11, 128, %s37_s13, [#allocation5]  }
   0x6   :  { %s60_s18 = sshll.u32 %s459_s17, 4  ;;  %s23_s21 = sshll.u32 %s563_s0, 4  ;;  %s61_s18 = int_to_ptr.vmem [resolvable:$true] %s60_s18  ;;  %s24_s21 = int_to_ptr.hbm [resolvable:$true] %s23_s21 }
   0x7   :  { %63 = dma.hbm_to_vmem [thread:$0]  %s59_s16, 128, %s61_s18, [#allocation8]  }
   0x8   :  { %s44_s23 = sshll.u32 %s565_s2, 4  ;;  %s460_s24 = smov [#allocation2]   ;;  %s45_s23 = int_to_ptr.hbm [resolvable:$true] %s44_s23 }
   0x9   :  { %s25_s25 = sshll.u32 %s460_s24, 4  ;;  %s461_s3 = smov [#allocation6]   ;;  %s26_s25 = int_to_ptr.vmem [resolvable:$true] %s25_s25 }
   0xa   :  { %28 = dma.hbm_to_vmem [thread:$0]  %s24_s21, 128, %s26_s25, [#allocation3]  }
   0xb   :  { %s46_s26 = sshll.u32 %s461_s3, 4  ;;  %s462_s27 = smov 128   ;;  %s47_s26 = int_to_ptr.vmem [resolvable:$true] %s46_s26 }
   0xc   :  { %s463_s28 = smov 8   ;;  %s69_s30 = sshll.u32 %s567_s4, 4  ;;  %s70_s30 = int_to_ptr.hbm [resolvable:$true] %s69_s30 }
   0xd   :  { %52 = dma.hbm_to_vmem [thread:$0]  %s45_s23, 256, %s47_s26, [#allocation5], %s462_s27, %s462_s27, %s463_s28  }
   0xe   :  { %s464_s10 = smov [#allocation9]   ;;  %s79_s13 = sshll.u32 %s568_s5, 4  ;;  %s80_s13 = int_to_ptr.hbm [resolvable:$true] %s79_s13 }
   0xf   :  { %s71_s11 = sshll.u32 %s464_s10, 4  ;;  %s465_s14 = smov [#allocation10]   ;;  %s72_s11 = int_to_ptr.vmem [resolvable:$true] %s71_s11 }
  0x10   :  { %74 = dma.hbm_to_vmem [thread:$0]  %s70_s30, 16, %s72_s11, [#allocation8]  }
  0x11   :  { %s81_s15 = sshll.u32 %s465_s14, 4  ;;  %s82_s15 = int_to_ptr.vmem [resolvable:$true] %s81_s15 }
  0x12   :  { %87 = dma.hbm_to_vmem [thread:$0]  %s80_s13, 1024, %s82_s15, [#allocation11], %s462_s27, %s462_s27, %s463_s28  }
  0x13   :  { %450 = dma.done.wait [#allocation3], 128  }
  0x14   :  { %451 = vsyncadd [#allocation3], 4294967168 }
  0x15   :  { %452 = dma.done.wait [#allocation5], 384  }
  0x16   :  { %453 = vsyncadd [#allocation5], 4294966912 }
  0x17   :  { %454 = dma.done.wait [#allocation8], 144  }
  0x18   :  { %455 = vsyncadd [#allocation8], 4294967152 }
  0x19   :  { %456 = dma.done.wait [#allocation11], 1024  }
  0x1a   :  { %457 = vsyncadd [#allocation11], 4294966272  ;;  %vm123_vm0 = vcmask 64512   ;;  %v121_v0 = vld [vmem:[#allocation6 + $0x8] sm:$0xff]  ;;  %v122_v1 = vld [vmem:[#allocation7] sm:$0xff]  ;;  %vm147_vm1 = vcmask 130048  }
  0x1b   :  { %v120_v2 = vld [vmem:[#allocation6] sm:$0xff]  ;;  %165 = vmatpush.msra.mxu1 %v121_v0  ;;  %142 = vmatpush.msra.mxu0 %v122_v1  ;;  %v119_v3 = vld [vmem:[#allocation4] sm:$0xff]  ;;  %v118_v4 = vld [vmem:[#allocation2] sm:$0xff]  ;;  %vm185_vm2 = vcmask 261120   ;;  %s466_s4 = smov 96   ;;  %vm223_vm3 = vcmask 7168  }
  0x1c   :  { %284 = vmatmul.msk.f32.vlgmr.msra.gmra.mxu0 %vm123_vm0, %v119_v3  ;;  %v180_v5 = vld [vmem:[#allocation10 + $0x18] sm:$0xff]  ;;  %v179_v6 = vld [vmem:[#allocation10 + $0x10] sm:$0xff]  ;;  %v178_v7 = vld [vmem:[#allocation10 + $0x8] sm:$0xff]  ;;  %vm274_vm4 = vcmask 15368  }
  0x1d   :  { %166 = vmatpush.msra.mxu1 %v120_v2  ;;  %201 = vmatpush.msra.mxu2 %v180_v5  ;;  %v177_v8 = vld [vmem:[#allocation10] sm:$0xff]  ;;  %v229_v9 = vld [vmem:[#allocation10 + $0x38] sm:$0xff]  ;;  %v228_v10 = vld [vmem:[#allocation10 + $0x30] sm:$0xff] }
  0x1e   :  { %285 = vmatmul.msk.f32.vlgmr.msra.gmra.mxu1 %vm147_vm1, %v118_v4  ;;  %251 = vmatpush.msra.mxu3 %v229_v9  ;;  %v227_v11 = vld [vmem:[#allocation10 + $0x28] sm:$0xff]  ;;  %v226_v12 = vld [vmem:[#allocation10 + $0x20] sm:$0xff]  ;;  %v299_v14 = vld [vmem:[#allocation9] ss:$0 sm:$0xff] }
  0x1f   :  { %202 = vmatpush.msra.mxu2 %v179_v6  ;;  %v300_v20 = vld [vmem:[%s569_s6] ss:$0 sm:$0xff]  ;;  %v302_v27 = vld [vmem:[%s569_s6 + $0x1] ss:$0 sm:$0xff] }
  0x20   :  { %252 = vmatpush.msra.mxu3 %v228_v10  ;;  %v301_v23 = vld [vmem:[%s570_s7] ss:$0 sm:$0xff]  ;;  %v303_v30 = vld [vmem:[%s570_s7 + $0x1] ss:$0 sm:$0xff] }
  0x21   :  { %203 = vmatpush.msra.mxu2 %v178_v7  ;;  %v304_v33 = vld [vmem:[%s571_s8] ss:$0 sm:$0xff] }
  0x22   :  { %253 = vmatpush.msra.mxu3 %v227_v11  ;;  %v305_v37 = vld [vmem:[%s571_s8] ss:$0 sm:$0xff] }
  0x23   :  { %204 = vmatpush.msra.mxu2 %v177_v8 }
  0x24   :  { %254 = vmatpush.msra.mxu3 %v226_v12 }
  0x99   :  { %v144_v13 = vpop.f32.mrf.mxu0 }
  0x9b   :  { %v168_v15 = vpop.f32.mrf.mxu1 }
  0x9c   :  { %v169_v16 = vadd.f32 %v168_v15, %v144_v13 }
  0x9e   :  { %v175_v17 = vadd.f32 %v299_v14, %v169_v16 }
  0xa0   :  { %v176_v18 = vmax.f32 %v175_v17, 0.0 }
  0xa2   :  { %235 = vrot.lane.b32.xlu0 %v176_v18, %s466_s4  ;;  %286 = vmatmul.msk.f32.vlgmr.msra.gmra.mxu2 %vm185_vm2, %v176_v18 }
 0x114   :  { %v236_v19 = vpop.permute.xlu0 %235 }
 0x115   :  { %288 = vmatmul.msk.f32.vlgmr.msra.gmra.mxu3 %vm185_vm2, %v236_v19 }
 0x125   :  { %v206_v21 = vpop.f32.mrf.mxu2 }
 0x126   :  { %v207_v22 = vadd.f32 %v300_v20, %v206_v21 }
 0x128   :  { %v209_v24 = vmax.f32 %v207_v22, 0.0 }
 0x12a   :  { %v214_v25 = vmul.f32 %v301_v23, %v209_v24 }
 0x12c   :  { %v215_v26 = vsel %vm185_vm2, %v214_v25, 0.0 }
 0x12d   :  { %216 = vadd.xlane.f32.xlu0 %v215_v26 }
 0x198   :  { %v256_v28 = vpop.f32.mrf.mxu3 }
 0x199   :  { %v257_v29 = vadd.f32 %v302_v27, %v256_v28 }
 0x19b   :  { %v259_v31 = vmax.f32 %v257_v29, 0.0 }
 0x19d   :  { %v265_v32 = vmul.f32 %v303_v30, %v259_v31 }
 0x19f   :  { %v266_v34 = vsel %vm185_vm2, %v265_v32, 0.0 }
 0x1a0   :  { %267 = vadd.xlane.f32.xlu1 %v266_v34  ;;  %v217_v35 = vpop.xlane.xlu0 %216 }
 0x1a1   :  { %v222_v36 = vadd.f32 %v304_v33, %v217_v35 }
 0x1a3   :  { %224 = vst.msk [vmem:[%s572_s9] sm:$0xff] %vm223_vm3, %v222_v36 }
 0x213   :  { %v268_v38 = vpop.xlane.xlu1 %267 }
 0x214   :  { %v273_v39 = vadd.f32 %v305_v37, %v268_v38 }
 0x216   :  { %275 = vst.msk [vmem:[%s572_s9] sm:$0xff] %vm274_vm4, %v273_v39 }
 0x217   :  { %280 = vsyncpa [#allocation3], 1 }
 0x218   :  { %281 = vsyncpa [#allocation5], 1 }
 0x219   :  { %282 = vsyncpa [#allocation8], 1 }
 0x21a   :  { %283 = vsyncpa [#allocation11], 1 }

</bundles_post_ra>
